<compile_context>
chip_gen: v5e
topology: v5e:2x2
jax: 0.10.0
libtpu: 0.0.40
codegen_flags: <defaults>
</compile_context>

<pallas_src>
import numpy as np

import jax
import jax.numpy as jnp
from jax.experimental import pallas as pl
from jax.experimental.pallas import tpu as pltpu


# -----------------------------------------------------------------------------
# Pallas kernel: fused (content + template) length-masked BiLSTM + classifier
# -----------------------------------------------------------------------------
def bilstm_filling_kernel(xg_ref, len_ref, whh_ref, cls_ref, out_ref):
  """Fused length-masked BiLSTM (both encoders) + linear classifier.

  xg_ref : (T*2B, 8H) gate pre-activations (input projection + bias folded in).
           Row block s*2B..(s+1)*2B: rows [0,B) content, [B,2B) template;
           forward gate columns come from token s, backward from token T-1-s.
  len_ref: (2B, 1) int32 lengths (rows [0,B) content, [B,2B) template).
  whh_ref: (4H, 8H) recurrent weights; rows [0,2H) content, [2H,4H) template.
  cls_ref: (4H+1, Ppad) classifier; rows [0,2H) W_template, [2H,4H) W_content,
           row 4H bias.  Ppad = 128-padded max_position.
  out_ref: (B, Ppad) pred_positions (lane-padded).
  """
  TB2, H8 = xg_ref.shape
  B2 = len_ref.shape[0]
  T = TB2 // B2
  B = B2 // 2
  H = H8 // 8
  H2, H4, H6 = 2 * H, 4 * H, 6 * H

  lens = len_ref[...]                              # (2B, 1) int32
  whh = whh_ref[...]                               # (4H, 8H)
  whh_c = whh[:H2, :]
  whh_t = whh[H2:, :]
  xg = xg_ref[...]                                 # (T*2B, 8H)

  # In-kernel constants (iota-built -> staged, never captured).
  col8 = jax.lax.broadcasted_iota(jnp.int32, (1, H8), 1)
  sig_cols = col8 < H6                                      # sigmoid slab mask
  scale = jnp.where(sig_cols, 0.5, 1.0).astype(jnp.float32)  # (1, 8H)
  shift = jnp.where(sig_cols, 0.5, 0.0).astype(jnp.float32)  # (1, 8H)
  enc_rows = jax.lax.broadcasted_iota(jnp.int32, (B2, 1), 0) < B  # content rows

  # Hoisted time-index table for the length masks:
  #   tmat[s, d] = s for forward columns (d < H), T-1-s for backward columns.
  srow = jax.lax.broadcasted_iota(jnp.int32, (T, H2), 0)
  dcol = jax.lax.broadcasted_iota(jnp.int32, (T, H2), 1)
  tmat = jnp.where(dcol < H, srow, T - 1 - srow)            # (T, 2H)

  # State columns: [0,H) forward direction, [H,2H) backward direction.
  h = jnp.zeros((B2, H2), jnp.float32)
  c = jnp.zeros((B2, H2), jnp.float32)

  # Fully unrolled recurrence; only h @ Whh remains on the serial chain.
  for s in range(T):
    rec_c = jnp.dot(h, whh_c, preferred_element_type=jnp.float32)   # (2B, 8H)
    rec_t = jnp.dot(h, whh_t, preferred_element_type=jnp.float32)
    gates = xg[s * B2:(s + 1) * B2, :] + jnp.where(enc_rows, rec_c, rec_t)

    # Single EUP pass over all 8H columns:
    #   sigmoid cols: 0.5*tanh(0.5*x)+0.5   (exactly sigmoid(x))
    #   tanh cols   : tanh(x)
    t_all = jnp.tanh(gates * scale)
    act = t_all * scale + shift
    i_g = act[:, :H2]
    f_g = act[:, H2:H4]
    o_g = act[:, H4:H6]
    g_g = act[:, H6:]

    c_new = f_g * c + i_g * g_g
    h_new = o_g * jnp.tanh(c_new)

    # Packed-sequence semantics: update iff the step's time index < length.
    live = tmat[s:s + 1, :] < lens                           # (2B, 2H)
    c = jnp.where(live, c_new, c)
    h = jnp.where(live, h_new, h)

  # Fused classifier: [template_h | content_h] @ W_out + b  (lane-padded out).
  cls = cls_ref[...]
  w_t = cls[:H2, :]
  w_c = cls[H2:H4, :]
  b = cls[H4:H4 + 1, :]
  out_ref[...] = (jnp.dot(h[B:, :], w_t, preferred_element_type=jnp.float32)
                  + jnp.dot(h[:B, :], w_c, preferred_element_type=jnp.float32)
                  + b)


# -----------------------------------------------------------------------------
# Wrapper
# -----------------------------------------------------------------------------
@jax.jit
def forward(params, input_ids1, input_mask1, input_lengths1,
            input_ids2, input_mask2, input_lengths2):
  """Reproduces BiLSTM_FillingClassifier.forward(..., positions=None)."""
  del input_mask1, input_mask2          # unused in the torch forward as well
  f = params["fused"]
  B, T = input_ids1.shape
  V = params["emb"].shape[0]
  P = params["b_out"].shape[1]
  H8 = f["tab_all"].shape[1]
  P_pad = f["cls_all"].shape[1]

  # Gather gate pre-activations straight from the projection-folded table.
  # Table row blocks: [content_fwd | template_fwd | content_bwd | template_bwd]
  ids = jnp.concatenate([input_ids1, input_ids2 + V], axis=0).astype(jnp.int32)
  idx_fwd = ids.T                                   # (T, 2B): token at step s
  idx_bwd = jnp.flip(ids, axis=1).T + 2 * V         # (T, 2B): token at T-1-s
  xg = (jnp.take(f["tab_all"], idx_fwd, axis=0)
        + jnp.take(f["tab_all"], idx_bwd, axis=0)).reshape(T * 2 * B, H8)

  lens = jnp.concatenate([input_lengths1, input_lengths2]
                         ).astype(jnp.int32).reshape(2 * B, 1)

  vmem = pl.BlockSpec(memory_space=pltpu.MemorySpace.VMEM)
  out = pl.pallas_call(
      bilstm_filling_kernel,
      out_shape=jax.ShapeDtypeStruct((B, P_pad), jnp.float32),
      in_specs=[vmem] * 4,
      out_specs=vmem,
  )(xg, lens, f["whh_all"], f["cls_all"])
  return out[:, :P]


# -----------------------------------------------------------------------------
# Parameter construction (shapes match nn.Module __init__) + fused layout prep
# -----------------------------------------------------------------------------
def _fuse_dirs(w_f, w_b):
  """(K,4H)x2 [i,f,g,o] -> (K,8H) [i_f,i_b,f_f,f_b,o_f,o_b,g_f,g_b]."""
  i_f, f_f, g_f, o_f = jnp.split(w_f, 4, axis=1)
  i_b, f_b, g_b, o_b = jnp.split(w_b, 4, axis=1)
  return jnp.concatenate([i_f, i_b, f_f, f_b, o_f, o_b, g_f, g_b], axis=1)


def _prepare_fused(raw, H, E):
  c, t = raw["content"], raw["template"]
  emb = raw["emb"]
  ze = jnp.zeros((E, 4 * H), jnp.float32)
  zh = jnp.zeros((H, 4 * H), jnp.float32)

  bias_c = _fuse_dirs(c["f"]["b"], c["b"]["b"])                      # (1, 8H)
  bias_t = _fuse_dirs(t["f"]["b"], t["b"]["b"])

  # Input projection folded into the embedding table; biases folded into the
  # forward blocks (each xg row uses exactly one forward + one backward row).
  tab_c_f = emb @ _fuse_dirs(c["f"]["wih"], ze) + bias_c             # (V, 8H)
  tab_t_f = emb @ _fuse_dirs(t["f"]["wih"], ze) + bias_t
  tab_c_b = emb @ _fuse_dirs(ze, c["b"]["wih"])
  tab_t_b = emb @ _fuse_dirs(ze, t["b"]["wih"])
  tab_all = jnp.concatenate([tab_c_f, tab_t_f, tab_c_b, tab_t_b], axis=0)

  whh_all = jnp.concatenate([
      _fuse_dirs(c["f"]["whh"], zh), _fuse_dirs(zh, c["b"]["whh"]),  # content
      _fuse_dirs(t["f"]["whh"], zh), _fuse_dirs(zh, t["b"]["whh"]),  # template
  ], axis=0)                                                         # (4H, 8H)

  # Classifier slab, lane-padded: rows [0,2H) W_template, [2H,4H) W_content,
  # row 4H bias.  hidden_concated = [template_h(2H) | content_h(2H)].
  w_out, b_out = raw["w_out"], raw["b_out"]                          # (4H,P),(1,P)
  P = w_out.shape[1]
  P_pad = ((P + 127) // 128) * 128
  cls_all = jnp.zeros((4 * H + 1, P_pad), jnp.float32)
  cls_all = cls_all.at[:2 * H, :P].set(w_out[:2 * H, :])
  cls_all = cls_all.at[2 * H:4 * H, :P].set(w_out[2 * H:, :])
  cls_all = cls_all.at[4 * H:4 * H + 1, :P].set(b_out)
  return dict(tab_all=tab_all, whh_all=whh_all, cls_all=cls_all)


def init_params(key, vocab_size, max_position, embedding_dim, hidden_dim):
  H = hidden_dim // 2                      # per-direction hidden size
  k_lstm = 1.0 / np.sqrt(H)
  k_lin = 1.0 / np.sqrt(2 * hidden_dim)
  kit = iter(jax.random.split(key, 20))

  def unif(k, shape, bound):
    return jax.random.uniform(k, shape, jnp.float32, -bound, bound)

  def lstm_dir():
    # PyTorch layout: W_ih:(4H,E), W_hh:(4H,H), b_ih/b_hh:(4H,), gates i,f,g,o
    w_ih = unif(next(kit), (4 * H, embedding_dim), k_lstm)
    w_hh = unif(next(kit), (4 * H, H), k_lstm)
    b_ih = unif(next(kit), (4 * H,), k_lstm)
    b_hh = unif(next(kit), (4 * H,), k_lstm)
    return dict(wih=w_ih.T, whh=w_hh.T, b=(b_ih + b_hh).reshape(1, 4 * H))

  def encoder():
    return dict(f=lstm_dir(), b=lstm_dir())

  raw = dict(
      content=encoder(),
      template=encoder(),
      emb=jax.random.normal(next(kit), (vocab_size, embedding_dim), jnp.float32),
      w_out=unif(next(kit), (max_position, 2 * hidden_dim), k_lin).T,  # (4H,P)
      b_out=unif(next(kit), (max_position,), k_lin).reshape(1, max_position),
  )
  raw["fused"] = _prepare_fused(raw, H, embedding_dim)
  return raw


# -----------------------------------------------------------------------------
# Pure-JAX reference (packed-BiLSTM final-hidden semantics) for validation
# -----------------------------------------------------------------------------
def _lstm_dir_ref(x_bte, lens, p, reverse):
  B, T, _ = x_bte.shape
  H = p["whh"].shape[0]
  h = jnp.zeros((B, H), jnp.float32)
  c = jnp.zeros((B, H), jnp.float32)
  steps = range(T - 1, -1, -1) if reverse else range(T)
  for t in steps:
    x_t = x_bte[:, t, :]
    gates = x_t @ p["wih"] + h @ p["whh"] + p["b"]
    i = jax.nn.sigmoid(gates[:, :H])
    f = jax.nn.sigmoid(gates[:, H:2 * H])
    g = jnp.tanh(gates[:, 2 * H:3 * H])
    o = jax.nn.sigmoid(gates[:, 3 * H:])
    c_new = f * c + i * g
    h_new = o * jnp.tanh(c_new)
    m = (t < lens)[:, None]
    h = jnp.where(m, h_new, h)
    c = jnp.where(m, c_new, c)
  return h


def forward_ref(params, ids1, lens1, ids2, lens2):
  emb = params["emb"]
  ce = jnp.take(emb, ids1, axis=0)
  te = jnp.take(emb, ids2, axis=0)

  def enc_hidden(x, lens, e):
    hf = _lstm_dir_ref(x, lens, e["f"], False)
    hb = _lstm_dir_ref(x, lens, e["b"], True)
    return jnp.concatenate([hf, hb], axis=1)

  ch = enc_hidden(ce, lens1, params["content"])
  th = enc_hidden(te, lens2, params["template"])
  cat = jnp.concatenate([th, ch], axis=1)
  return cat @ params["w_out"] + params["b_out"]


# -----------------------------------------------------------------------------
if __name__ == "__main__":
  VOCAB = 50
  MAX_POS = 10
  EMB = 16
  HIDDEN = 32          # hidden_dim; per-direction H = 16 -> 8H = 128 lanes
  B, T = 4, 8          # fused kernel batch = 2B = 8 -> full sublane group

  root = jax.random.PRNGKey(0)
  k_par, k_id1, k_id2 = jax.random.split(root, 3)
  params = init_params(k_par, VOCAB, MAX_POS, EMB, HIDDEN)

  input_ids1 = jax.random.randint(k_id1, (B, T), 0, VOCAB, dtype=jnp.int32)
  input_ids2 = jax.random.randint(k_id2, (B, T), 0, VOCAB, dtype=jnp.int32)
  input_lengths1 = jnp.array([8, 5, 3, 8], dtype=jnp.int32)
  input_lengths2 = jnp.array([6, 8, 2, 4], dtype=jnp.int32)
  # masks are unused by the forward pass (kept for signature fidelity)
  input_mask1 = (jnp.arange(T)[None, :] < input_lengths1[:, None]).astype(jnp.int32)
  input_mask2 = (jnp.arange(T)[None, :] < input_lengths2[:, None]).astype(jnp.int32)

  pred = forward(params, input_ids1, input_mask1, input_lengths1,
                 input_ids2, input_mask2, input_lengths2)
  pred = jax.block_until_ready(pred)
  assert pred.shape == (B, MAX_POS)

  ref = forward_ref(params, input_ids1, input_lengths1,
                    input_ids2, input_lengths2)
  max_diff = float(jnp.max(jnp.abs(pred - ref)))
  assert jnp.allclose(pred, ref, rtol=1e-3, atol=1e-3), (
      f"max abs diff {max_diff}")

  # TODO(synk): the positions!=None training branch (CrossEntropyLoss +
  # accuracy) is not part of the inference forward and is not implemented.
  print("KERNEL_OK")
</pallas_src>

<mosaic_0001>
module attributes {stable_mosaic.version = 11 : i64} {
  func.func @bilstm_filling_kernel(%arg0: memref<64x128xf32, #tpu.memory_space<vmem>>, %arg1: memref<8x1xi32, #tpu.memory_space<vmem>>, %arg2: memref<64x128xf32, #tpu.memory_space<vmem>>, %arg3: memref<65x128xf32, #tpu.memory_space<vmem>>, %arg4: memref<4x128xf32, #tpu.memory_space<vmem>>) attributes {dimension_semantics = [], scalar_prefetch = 0 : i64, scratch_operands = 0 : i64, tpu.core_type = #tpu.core_type<tc>} {
    %c0 = arith.constant 0 : index
    %c0_0 = arith.constant 0 : index
    %0 = vector.load %arg1[%c0, %c0_0] : memref<8x1xi32, #tpu.memory_space<vmem>>, vector<8x1xi32>
    %c0_1 = arith.constant 0 : index
    %c0_2 = arith.constant 0 : index
    %1 = vector.load %arg2[%c0_1, %c0_2] : memref<64x128xf32, #tpu.memory_space<vmem>>, vector<64x128xf32>
    %2 = vector.extract_strided_slice %1 {offsets = [0, 0], sizes = [32, 128], strides = [1, 1]} : vector<64x128xf32> to vector<32x128xf32>
    %3 = vector.extract_strided_slice %1 {offsets = [32, 0], sizes = [32, 128], strides = [1, 1]} : vector<64x128xf32> to vector<32x128xf32>
    %c0_3 = arith.constant 0 : index
    %c0_4 = arith.constant 0 : index
    %4 = vector.load %arg0[%c0_3, %c0_4] : memref<64x128xf32, #tpu.memory_space<vmem>>, vector<64x128xf32>
    %5 = tpu.iota {dimensions = array<i32: 1>} : vector<1x128xi32>
    %c96_i32 = arith.constant 96 : i32
    %6 = vector.broadcast %c96_i32 : i32 to vector<1x128xi32>
    %7 = arith.cmpi slt, %5, %6 : vector<1x128xi32>
    %cst = arith.constant 5.000000e-01 : f32
    %cst_5 = arith.constant 1.000000e+00 : f32
    %8 = vector.broadcast %cst : f32 to vector<1x128xf32>
    %9 = vector.broadcast %cst_5 : f32 to vector<1x128xf32>
    %10 = arith.select %7, %8, %9 : vector<1x128xi1>, vector<1x128xf32>
    %cst_6 = arith.constant 5.000000e-01 : f32
    %cst_7 = arith.constant 0.000000e+00 : f32
    %11 = vector.broadcast %cst_6 : f32 to vector<1x128xf32>
    %12 = vector.broadcast %cst_7 : f32 to vector<1x128xf32>
    %13 = arith.select %7, %11, %12 : vector<1x128xi1>, vector<1x128xf32>
    %14 = tpu.iota {dimensions = array<i32: 0>} : vector<8x1xi32>
    %c4_i32 = arith.constant 4 : i32
    %15 = vector.broadcast %c4_i32 : i32 to vector<8x1xi32>
    %16 = arith.cmpi slt, %14, %15 : vector<8x1xi32>
    %17 = tpu.iota {dimensions = array<i32: 0>} : vector<8x32xi32>
    %18 = tpu.iota {dimensions = array<i32: 1>} : vector<8x32xi32>
    %c16_i32 = arith.constant 16 : i32
    %19 = vector.broadcast %c16_i32 : i32 to vector<8x32xi32>
    %20 = arith.cmpi slt, %18, %19 : vector<8x32xi32>
    %c7_i32 = arith.constant 7 : i32
    %21 = vector.broadcast %c7_i32 : i32 to vector<8x32xi32>
    %22 = arith.subi %21, %17 : vector<8x32xi32>
    %23 = arith.select %20, %17, %22 : vector<8x32xi1>, vector<8x32xi32>
    %cst_8 = arith.constant 0.000000e+00 : f32
    %24 = vector.broadcast %cst_8 : f32 to vector<8x32xf32>
    %cst_9 = arith.constant 0.000000e+00 : f32
    %25 = vector.broadcast %cst_9 : f32 to vector<8x32xf32>
    %cst_10 = arith.constant dense<0.000000e+00> : vector<8x128xf32>
    %26 = tpu.matmul %24, %2, %cst_10 {dimension_numbers = #tpu.dot_dimension_numbers<[1], [0], [0], [1], [0, 0, 1, 1], [], []>} : vector<8x32xf32>, vector<32x128xf32>, vector<8x128xf32> -> vector<8x128xf32>
    %cst_11 = arith.constant dense<0.000000e+00> : vector<8x128xf32>
    %27 = tpu.matmul %24, %3, %cst_11 {dimension_numbers = #tpu.dot_dimension_numbers<[1], [0], [0], [1], [0, 0, 1, 1], [], []>} : vector<8x32xf32>, vector<32x128xf32>, vector<8x128xf32> -> vector<8x128xf32>
    %28 = vector.extract_strided_slice %4 {offsets = [0, 0], sizes = [8, 128], strides = [1, 1]} : vector<64x128xf32> to vector<8x128xf32>
    %29 = vector.shape_cast %16 : vector<8x1xi1> to vector<8x1xi1>
    %30 = vector.broadcast %29 : vector<8x1xi1> to vector<8x128xi1>
    %31 = arith.select %30, %26, %27 : vector<8x128xi1>, vector<8x128xf32>
    %32 = arith.addf %28, %31 : vector<8x128xf32>
    %33 = vector.broadcast %10 : vector<1x128xf32> to vector<8x128xf32>
    %34 = arith.mulf %32, %33 : vector<8x128xf32>
    %35 = math.tanh %34 : vector<8x128xf32>
    %36 = vector.broadcast %10 : vector<1x128xf32> to vector<8x128xf32>
    %37 = arith.mulf %35, %36 : vector<8x128xf32>
    %38 = vector.broadcast %13 : vector<1x128xf32> to vector<8x128xf32>
    %39 = arith.addf %37, %38 : vector<8x128xf32>
    %40 = vector.extract_strided_slice %39 {offsets = [0, 0], sizes = [8, 32], strides = [1, 1]} : vector<8x128xf32> to vector<8x32xf32>
    %41 = vector.extract_strided_slice %39 {offsets = [0, 32], sizes = [8, 32], strides = [1, 1]} : vector<8x128xf32> to vector<8x32xf32>
    %42 = vector.extract_strided_slice %39 {offsets = [0, 64], sizes = [8, 32], strides = [1, 1]} : vector<8x128xf32> to vector<8x32xf32>
    %43 = vector.extract_strided_slice %39 {offsets = [0, 96], sizes = [8, 32], strides = [1, 1]} : vector<8x128xf32> to vector<8x32xf32>
    %44 = arith.mulf %41, %25 : vector<8x32xf32>
    %45 = arith.mulf %40, %43 : vector<8x32xf32>
    %46 = arith.addf %44, %45 : vector<8x32xf32>
    %47 = math.tanh %46 : vector<8x32xf32>
    %48 = arith.mulf %42, %47 : vector<8x32xf32>
    %49 = vector.extract_strided_slice %23 {offsets = [0, 0], sizes = [1, 32], strides = [1, 1]} : vector<8x32xi32> to vector<1x32xi32>
    %50 = vector.broadcast %49 : vector<1x32xi32> to vector<8x32xi32>
    %51 = vector.broadcast %0 : vector<8x1xi32> to vector<8x32xi32>
    %52 = arith.cmpi slt, %50, %51 : vector<8x32xi32>
    %53 = arith.select %52, %46, %25 : vector<8x32xi1>, vector<8x32xf32>
    %54 = arith.select %52, %48, %24 : vector<8x32xi1>, vector<8x32xf32>
    %cst_12 = arith.constant dense<0.000000e+00> : vector<8x128xf32>
    %55 = tpu.matmul %54, %2, %cst_12 {dimension_numbers = #tpu.dot_dimension_numbers<[1], [0], [0], [1], [0, 0, 1, 1], [], []>} : vector<8x32xf32>, vector<32x128xf32>, vector<8x128xf32> -> vector<8x128xf32>
    %cst_13 = arith.constant dense<0.000000e+00> : vector<8x128xf32>
    %56 = tpu.matmul %54, %3, %cst_13 {dimension_numbers = #tpu.dot_dimension_numbers<[1], [0], [0], [1], [0, 0, 1, 1], [], []>} : vector<8x32xf32>, vector<32x128xf32>, vector<8x128xf32> -> vector<8x128xf32>
    %57 = vector.extract_strided_slice %4 {offsets = [8, 0], sizes = [8, 128], strides = [1, 1]} : vector<64x128xf32> to vector<8x128xf32>
    %58 = vector.shape_cast %16 : vector<8x1xi1> to vector<8x1xi1>
    %59 = vector.broadcast %58 : vector<8x1xi1> to vector<8x128xi1>
    %60 = arith.select %59, %55, %56 : vector<8x128xi1>, vector<8x128xf32>
    %61 = arith.addf %57, %60 : vector<8x128xf32>
    %62 = vector.broadcast %10 : vector<1x128xf32> to vector<8x128xf32>
    %63 = arith.mulf %61, %62 : vector<8x128xf32>
    %64 = math.tanh %63 : vector<8x128xf32>
    %65 = vector.broadcast %10 : vector<1x128xf32> to vector<8x128xf32>
    %66 = arith.mulf %64, %65 : vector<8x128xf32>
    %67 = vector.broadcast %13 : vector<1x128xf32> to vector<8x128xf32>
    %68 = arith.addf %66, %67 : vector<8x128xf32>
    %69 = vector.extract_strided_slice %68 {offsets = [0, 0], sizes = [8, 32], strides = [1, 1]} : vector<8x128xf32> to vector<8x32xf32>
    %70 = vector.extract_strided_slice %68 {offsets = [0, 32], sizes = [8, 32], strides = [1, 1]} : vector<8x128xf32> to vector<8x32xf32>
    %71 = vector.extract_strided_slice %68 {offsets = [0, 64], sizes = [8, 32], strides = [1, 1]} : vector<8x128xf32> to vector<8x32xf32>
    %72 = vector.extract_strided_slice %68 {offsets = [0, 96], sizes = [8, 32], strides = [1, 1]} : vector<8x128xf32> to vector<8x32xf32>
    %73 = arith.mulf %70, %53 : vector<8x32xf32>
    %74 = arith.mulf %69, %72 : vector<8x32xf32>
    %75 = arith.addf %73, %74 : vector<8x32xf32>
    %76 = math.tanh %75 : vector<8x32xf32>
    %77 = arith.mulf %71, %76 : vector<8x32xf32>
    %78 = vector.extract_strided_slice %23 {offsets = [1, 0], sizes = [1, 32], strides = [1, 1]} : vector<8x32xi32> to vector<1x32xi32>
    %79 = vector.broadcast %78 : vector<1x32xi32> to vector<8x32xi32>
    %80 = vector.broadcast %0 : vector<8x1xi32> to vector<8x32xi32>
    %81 = arith.cmpi slt, %79, %80 : vector<8x32xi32>
    %82 = arith.select %81, %75, %53 : vector<8x32xi1>, vector<8x32xf32>
    %83 = arith.select %81, %77, %54 : vector<8x32xi1>, vector<8x32xf32>
    %cst_14 = arith.constant dense<0.000000e+00> : vector<8x128xf32>
    %84 = tpu.matmul %83, %2, %cst_14 {dimension_numbers = #tpu.dot_dimension_numbers<[1], [0], [0], [1], [0, 0, 1, 1], [], []>} : vector<8x32xf32>, vector<32x128xf32>, vector<8x128xf32> -> vector<8x128xf32>
    %cst_15 = arith.constant dense<0.000000e+00> : vector<8x128xf32>
    %85 = tpu.matmul %83, %3, %cst_15 {dimension_numbers = #tpu.dot_dimension_numbers<[1], [0], [0], [1], [0, 0, 1, 1], [], []>} : vector<8x32xf32>, vector<32x128xf32>, vector<8x128xf32> -> vector<8x128xf32>
    %86 = vector.extract_strided_slice %4 {offsets = [16, 0], sizes = [8, 128], strides = [1, 1]} : vector<64x128xf32> to vector<8x128xf32>
    %87 = vector.shape_cast %16 : vector<8x1xi1> to vector<8x1xi1>
    %88 = vector.broadcast %87 : vector<8x1xi1> to vector<8x128xi1>
    %89 = arith.select %88, %84, %85 : vector<8x128xi1>, vector<8x128xf32>
    %90 = arith.addf %86, %89 : vector<8x128xf32>
    %91 = vector.broadcast %10 : vector<1x128xf32> to vector<8x128xf32>
    %92 = arith.mulf %90, %91 : vector<8x128xf32>
    %93 = math.tanh %92 : vector<8x128xf32>
    %94 = vector.broadcast %10 : vector<1x128xf32> to vector<8x128xf32>
    %95 = arith.mulf %93, %94 : vector<8x128xf32>
    %96 = vector.broadcast %13 : vector<1x128xf32> to vector<8x128xf32>
    %97 = arith.addf %95, %96 : vector<8x128xf32>
    %98 = vector.extract_strided_slice %97 {offsets = [0, 0], sizes = [8, 32], strides = [1, 1]} : vector<8x128xf32> to vector<8x32xf32>
    %99 = vector.extract_strided_slice %97 {offsets = [0, 32], sizes = [8, 32], strides = [1, 1]} : vector<8x128xf32> to vector<8x32xf32>
    %100 = vector.extract_strided_slice %97 {offsets = [0, 64], sizes = [8, 32], strides = [1, 1]} : vector<8x128xf32> to vector<8x32xf32>
    %101 = vector.extract_strided_slice %97 {offsets = [0, 96], sizes = [8, 32], strides = [1, 1]} : vector<8x128xf32> to vector<8x32xf32>
    %102 = arith.mulf %99, %82 : vector<8x32xf32>
    %103 = arith.mulf %98, %101 : vector<8x32xf32>
    %104 = arith.addf %102, %103 : vector<8x32xf32>
    %105 = math.tanh %104 : vector<8x32xf32>
    %106 = arith.mulf %100, %105 : vector<8x32xf32>
    %107 = vector.extract_strided_slice %23 {offsets = [2, 0], sizes = [1, 32], strides = [1, 1]} : vector<8x32xi32> to vector<1x32xi32>
    %108 = vector.broadcast %107 : vector<1x32xi32> to vector<8x32xi32>
    %109 = vector.broadcast %0 : vector<8x1xi32> to vector<8x32xi32>
    %110 = arith.cmpi slt, %108, %109 : vector<8x32xi32>
    %111 = arith.select %110, %104, %82 : vector<8x32xi1>, vector<8x32xf32>
    %112 = arith.select %110, %106, %83 : vector<8x32xi1>, vector<8x32xf32>
    %cst_16 = arith.constant dense<0.000000e+00> : vector<8x128xf32>
    %113 = tpu.matmul %112, %2, %cst_16 {dimension_numbers = #tpu.dot_dimension_numbers<[1], [0], [0], [1], [0, 0, 1, 1], [], []>} : vector<8x32xf32>, vector<32x128xf32>, vector<8x128xf32> -> vector<8x128xf32>
    %cst_17 = arith.constant dense<0.000000e+00> : vector<8x128xf32>
    %114 = tpu.matmul %112, %3, %cst_17 {dimension_numbers = #tpu.dot_dimension_numbers<[1], [0], [0], [1], [0, 0, 1, 1], [], []>} : vector<8x32xf32>, vector<32x128xf32>, vector<8x128xf32> -> vector<8x128xf32>
    %115 = vector.extract_strided_slice %4 {offsets = [24, 0], sizes = [8, 128], strides = [1, 1]} : vector<64x128xf32> to vector<8x128xf32>
    %116 = vector.shape_cast %16 : vector<8x1xi1> to vector<8x1xi1>
    %117 = vector.broadcast %116 : vector<8x1xi1> to vector<8x128xi1>
    %118 = arith.select %117, %113, %114 : vector<8x128xi1>, vector<8x128xf32>
    %119 = arith.addf %115, %118 : vector<8x128xf32>
    %120 = vector.broadcast %10 : vector<1x128xf32> to vector<8x128xf32>
    %121 = arith.mulf %119, %120 : vector<8x128xf32>
    %122 = math.tanh %121 : vector<8x128xf32>
    %123 = vector.broadcast %10 : vector<1x128xf32> to vector<8x128xf32>
    %124 = arith.mulf %122, %123 : vector<8x128xf32>
    %125 = vector.broadcast %13 : vector<1x128xf32> to vector<8x128xf32>
    %126 = arith.addf %124, %125 : vector<8x128xf32>
    %127 = vector.extract_strided_slice %126 {offsets = [0, 0], sizes = [8, 32], strides = [1, 1]} : vector<8x128xf32> to vector<8x32xf32>
    %128 = vector.extract_strided_slice %126 {offsets = [0, 32], sizes = [8, 32], strides = [1, 1]} : vector<8x128xf32> to vector<8x32xf32>
    %129 = vector.extract_strided_slice %126 {offsets = [0, 64], sizes = [8, 32], strides = [1, 1]} : vector<8x128xf32> to vector<8x32xf32>
    %130 = vector.extract_strided_slice %126 {offsets = [0, 96], sizes = [8, 32], strides = [1, 1]} : vector<8x128xf32> to vector<8x32xf32>
    %131 = arith.mulf %128, %111 : vector<8x32xf32>
    %132 = arith.mulf %127, %130 : vector<8x32xf32>
    %133 = arith.addf %131, %132 : vector<8x32xf32>
    %134 = math.tanh %133 : vector<8x32xf32>
    %135 = arith.mulf %129, %134 : vector<8x32xf32>
    %136 = vector.extract_strided_slice %23 {offsets = [3, 0], sizes = [1, 32], strides = [1, 1]} : vector<8x32xi32> to vector<1x32xi32>
    %137 = vector.broadcast %136 : vector<1x32xi32> to vector<8x32xi32>
    %138 = vector.broadcast %0 : vector<8x1xi32> to vector<8x32xi32>
    %139 = arith.cmpi slt, %137, %138 : vector<8x32xi32>
    %140 = arith.select %139, %133, %111 : vector<8x32xi1>, vector<8x32xf32>
    %141 = arith.select %139, %135, %112 : vector<8x32xi1>, vector<8x32xf32>
    %cst_18 = arith.constant dense<0.000000e+00> : vector<8x128xf32>
    %142 = tpu.matmul %141, %2, %cst_18 {dimension_numbers = #tpu.dot_dimension_numbers<[1], [0], [0], [1], [0, 0, 1, 1], [], []>} : vector<8x32xf32>, vector<32x128xf32>, vector<8x128xf32> -> vector<8x128xf32>
    %cst_19 = arith.constant dense<0.000000e+00> : vector<8x128xf32>
    %143 = tpu.matmul %141, %3, %cst_19 {dimension_numbers = #tpu.dot_dimension_numbers<[1], [0], [0], [1], [0, 0, 1, 1], [], []>} : vector<8x32xf32>, vector<32x128xf32>, vector<8x128xf32> -> vector<8x128xf32>
    %144 = vector.extract_strided_slice %4 {offsets = [32, 0], sizes = [8, 128], strides = [1, 1]} : vector<64x128xf32> to vector<8x128xf32>
    %145 = vector.shape_cast %16 : vector<8x1xi1> to vector<8x1xi1>
    %146 = vector.broadcast %145 : vector<8x1xi1> to vector<8x128xi1>
    %147 = arith.select %146, %142, %143 : vector<8x128xi1>, vector<8x128xf32>
    %148 = arith.addf %144, %147 : vector<8x128xf32>
    %149 = vector.broadcast %10 : vector<1x128xf32> to vector<8x128xf32>
    %150 = arith.mulf %148, %149 : vector<8x128xf32>
    %151 = math.tanh %150 : vector<8x128xf32>
    %152 = vector.broadcast %10 : vector<1x128xf32> to vector<8x128xf32>
    %153 = arith.mulf %151, %152 : vector<8x128xf32>
    %154 = vector.broadcast %13 : vector<1x128xf32> to vector<8x128xf32>
    %155 = arith.addf %153, %154 : vector<8x128xf32>
    %156 = vector.extract_strided_slice %155 {offsets = [0, 0], sizes = [8, 32], strides = [1, 1]} : vector<8x128xf32> to vector<8x32xf32>
    %157 = vector.extract_strided_slice %155 {offsets = [0, 32], sizes = [8, 32], strides = [1, 1]} : vector<8x128xf32> to vector<8x32xf32>
    %158 = vector.extract_strided_slice %155 {offsets = [0, 64], sizes = [8, 32], strides = [1, 1]} : vector<8x128xf32> to vector<8x32xf32>
    %159 = vector.extract_strided_slice %155 {offsets = [0, 96], sizes = [8, 32], strides = [1, 1]} : vector<8x128xf32> to vector<8x32xf32>
    %160 = arith.mulf %157, %140 : vector<8x32xf32>
    %161 = arith.mulf %156, %159 : vector<8x32xf32>
    %162 = arith.addf %160, %161 : vector<8x32xf32>
    %163 = math.tanh %162 : vector<8x32xf32>
    %164 = arith.mulf %158, %163 : vector<8x32xf32>
    %165 = vector.extract_strided_slice %23 {offsets = [4, 0], sizes = [1, 32], strides = [1, 1]} : vector<8x32xi32> to vector<1x32xi32>
    %166 = vector.broadcast %165 : vector<1x32xi32> to vector<8x32xi32>
    %167 = vector.broadcast %0 : vector<8x1xi32> to vector<8x32xi32>
    %168 = arith.cmpi slt, %166, %167 : vector<8x32xi32>
    %169 = arith.select %168, %162, %140 : vector<8x32xi1>, vector<8x32xf32>
    %170 = arith.select %168, %164, %141 : vector<8x32xi1>, vector<8x32xf32>
    %cst_20 = arith.constant dense<0.000000e+00> : vector<8x128xf32>
    %171 = tpu.matmul %170, %2, %cst_20 {dimension_numbers = #tpu.dot_dimension_numbers<[1], [0], [0], [1], [0, 0, 1, 1], [], []>} : vector<8x32xf32>, vector<32x128xf32>, vector<8x128xf32> -> vector<8x128xf32>
    %cst_21 = arith.constant dense<0.000000e+00> : vector<8x128xf32>
    %172 = tpu.matmul %170, %3, %cst_21 {dimension_numbers = #tpu.dot_dimension_numbers<[1], [0], [0], [1], [0, 0, 1, 1], [], []>} : vector<8x32xf32>, vector<32x128xf32>, vector<8x128xf32> -> vector<8x128xf32>
    %173 = vector.extract_strided_slice %4 {offsets = [40, 0], sizes = [8, 128], strides = [1, 1]} : vector<64x128xf32> to vector<8x128xf32>
    %174 = vector.shape_cast %16 : vector<8x1xi1> to vector<8x1xi1>
    %175 = vector.broadcast %174 : vector<8x1xi1> to vector<8x128xi1>
    %176 = arith.select %175, %171, %172 : vector<8x128xi1>, vector<8x128xf32>
    %177 = arith.addf %173, %176 : vector<8x128xf32>
    %178 = vector.broadcast %10 : vector<1x128xf32> to vector<8x128xf32>
    %179 = arith.mulf %177, %178 : vector<8x128xf32>
    %180 = math.tanh %179 : vector<8x128xf32>
    %181 = vector.broadcast %10 : vector<1x128xf32> to vector<8x128xf32>
    %182 = arith.mulf %180, %181 : vector<8x128xf32>
    %183 = vector.broadcast %13 : vector<1x128xf32> to vector<8x128xf32>
    %184 = arith.addf %182, %183 : vector<8x128xf32>
    %185 = vector.extract_strided_slice %184 {offsets = [0, 0], sizes = [8, 32], strides = [1, 1]} : vector<8x128xf32> to vector<8x32xf32>
    %186 = vector.extract_strided_slice %184 {offsets = [0, 32], sizes = [8, 32], strides = [1, 1]} : vector<8x128xf32> to vector<8x32xf32>
    %187 = vector.extract_strided_slice %184 {offsets = [0, 64], sizes = [8, 32], strides = [1, 1]} : vector<8x128xf32> to vector<8x32xf32>
    %188 = vector.extract_strided_slice %184 {offsets = [0, 96], sizes = [8, 32], strides = [1, 1]} : vector<8x128xf32> to vector<8x32xf32>
    %189 = arith.mulf %186, %169 : vector<8x32xf32>
    %190 = arith.mulf %185, %188 : vector<8x32xf32>
    %191 = arith.addf %189, %190 : vector<8x32xf32>
    %192 = math.tanh %191 : vector<8x32xf32>
    %193 = arith.mulf %187, %192 : vector<8x32xf32>
    %194 = vector.extract_strided_slice %23 {offsets = [5, 0], sizes = [1, 32], strides = [1, 1]} : vector<8x32xi32> to vector<1x32xi32>
    %195 = vector.broadcast %194 : vector<1x32xi32> to vector<8x32xi32>
    %196 = vector.broadcast %0 : vector<8x1xi32> to vector<8x32xi32>
    %197 = arith.cmpi slt, %195, %196 : vector<8x32xi32>
    %198 = arith.select %197, %191, %169 : vector<8x32xi1>, vector<8x32xf32>
    %199 = arith.select %197, %193, %170 : vector<8x32xi1>, vector<8x32xf32>
    %cst_22 = arith.constant dense<0.000000e+00> : vector<8x128xf32>
    %200 = tpu.matmul %199, %2, %cst_22 {dimension_numbers = #tpu.dot_dimension_numbers<[1], [0], [0], [1], [0, 0, 1, 1], [], []>} : vector<8x32xf32>, vector<32x128xf32>, vector<8x128xf32> -> vector<8x128xf32>
    %cst_23 = arith.constant dense<0.000000e+00> : vector<8x128xf32>
    %201 = tpu.matmul %199, %3, %cst_23 {dimension_numbers = #tpu.dot_dimension_numbers<[1], [0], [0], [1], [0, 0, 1, 1], [], []>} : vector<8x32xf32>, vector<32x128xf32>, vector<8x128xf32> -> vector<8x128xf32>
    %202 = vector.extract_strided_slice %4 {offsets = [48, 0], sizes = [8, 128], strides = [1, 1]} : vector<64x128xf32> to vector<8x128xf32>
    %203 = vector.shape_cast %16 : vector<8x1xi1> to vector<8x1xi1>
    %204 = vector.broadcast %203 : vector<8x1xi1> to vector<8x128xi1>
    %205 = arith.select %204, %200, %201 : vector<8x128xi1>, vector<8x128xf32>
    %206 = arith.addf %202, %205 : vector<8x128xf32>
    %207 = vector.broadcast %10 : vector<1x128xf32> to vector<8x128xf32>
    %208 = arith.mulf %206, %207 : vector<8x128xf32>
    %209 = math.tanh %208 : vector<8x128xf32>
    %210 = vector.broadcast %10 : vector<1x128xf32> to vector<8x128xf32>
    %211 = arith.mulf %209, %210 : vector<8x128xf32>
    %212 = vector.broadcast %13 : vector<1x128xf32> to vector<8x128xf32>
    %213 = arith.addf %211, %212 : vector<8x128xf32>
    %214 = vector.extract_strided_slice %213 {offsets = [0, 0], sizes = [8, 32], strides = [1, 1]} : vector<8x128xf32> to vector<8x32xf32>
    %215 = vector.extract_strided_slice %213 {offsets = [0, 32], sizes = [8, 32], strides = [1, 1]} : vector<8x128xf32> to vector<8x32xf32>
    %216 = vector.extract_strided_slice %213 {offsets = [0, 64], sizes = [8, 32], strides = [1, 1]} : vector<8x128xf32> to vector<8x32xf32>
    %217 = vector.extract_strided_slice %213 {offsets = [0, 96], sizes = [8, 32], strides = [1, 1]} : vector<8x128xf32> to vector<8x32xf32>
    %218 = arith.mulf %215, %198 : vector<8x32xf32>
    %219 = arith.mulf %214, %217 : vector<8x32xf32>
    %220 = arith.addf %218, %219 : vector<8x32xf32>
    %221 = math.tanh %220 : vector<8x32xf32>
    %222 = arith.mulf %216, %221 : vector<8x32xf32>
    %223 = vector.extract_strided_slice %23 {offsets = [6, 0], sizes = [1, 32], strides = [1, 1]} : vector<8x32xi32> to vector<1x32xi32>
    %224 = vector.broadcast %223 : vector<1x32xi32> to vector<8x32xi32>
    %225 = vector.broadcast %0 : vector<8x1xi32> to vector<8x32xi32>
    %226 = arith.cmpi slt, %224, %225 : vector<8x32xi32>
    %227 = arith.select %226, %220, %198 : vector<8x32xi1>, vector<8x32xf32>
    %228 = arith.select %226, %222, %199 : vector<8x32xi1>, vector<8x32xf32>
    %cst_24 = arith.constant dense<0.000000e+00> : vector<8x128xf32>
    %229 = tpu.matmul %228, %2, %cst_24 {dimension_numbers = #tpu.dot_dimension_numbers<[1], [0], [0], [1], [0, 0, 1, 1], [], []>} : vector<8x32xf32>, vector<32x128xf32>, vector<8x128xf32> -> vector<8x128xf32>
    %cst_25 = arith.constant dense<0.000000e+00> : vector<8x128xf32>
    %230 = tpu.matmul %228, %3, %cst_25 {dimension_numbers = #tpu.dot_dimension_numbers<[1], [0], [0], [1], [0, 0, 1, 1], [], []>} : vector<8x32xf32>, vector<32x128xf32>, vector<8x128xf32> -> vector<8x128xf32>
    %231 = vector.extract_strided_slice %4 {offsets = [56, 0], sizes = [8, 128], strides = [1, 1]} : vector<64x128xf32> to vector<8x128xf32>
    %232 = vector.shape_cast %16 : vector<8x1xi1> to vector<8x1xi1>
    %233 = vector.broadcast %232 : vector<8x1xi1> to vector<8x128xi1>
    %234 = arith.select %233, %229, %230 : vector<8x128xi1>, vector<8x128xf32>
    %235 = arith.addf %231, %234 : vector<8x128xf32>
    %236 = vector.broadcast %10 : vector<1x128xf32> to vector<8x128xf32>
    %237 = arith.mulf %235, %236 : vector<8x128xf32>
    %238 = math.tanh %237 : vector<8x128xf32>
    %239 = vector.broadcast %10 : vector<1x128xf32> to vector<8x128xf32>
    %240 = arith.mulf %238, %239 : vector<8x128xf32>
    %241 = vector.broadcast %13 : vector<1x128xf32> to vector<8x128xf32>
    %242 = arith.addf %240, %241 : vector<8x128xf32>
    %243 = vector.extract_strided_slice %242 {offsets = [0, 0], sizes = [8, 32], strides = [1, 1]} : vector<8x128xf32> to vector<8x32xf32>
    %244 = vector.extract_strided_slice %242 {offsets = [0, 32], sizes = [8, 32], strides = [1, 1]} : vector<8x128xf32> to vector<8x32xf32>
    %245 = vector.extract_strided_slice %242 {offsets = [0, 64], sizes = [8, 32], strides = [1, 1]} : vector<8x128xf32> to vector<8x32xf32>
    %246 = vector.extract_strided_slice %242 {offsets = [0, 96], sizes = [8, 32], strides = [1, 1]} : vector<8x128xf32> to vector<8x32xf32>
    %247 = arith.mulf %244, %227 : vector<8x32xf32>
    %248 = arith.mulf %243, %246 : vector<8x32xf32>
    %249 = arith.addf %247, %248 : vector<8x32xf32>
    %250 = math.tanh %249 : vector<8x32xf32>
    %251 = arith.mulf %245, %250 : vector<8x32xf32>
    %252 = vector.extract_strided_slice %23 {offsets = [7, 0], sizes = [1, 32], strides = [1, 1]} : vector<8x32xi32> to vector<1x32xi32>
    %253 = vector.broadcast %252 : vector<1x32xi32> to vector<8x32xi32>
    %254 = vector.broadcast %0 : vector<8x1xi32> to vector<8x32xi32>
    %255 = arith.cmpi slt, %253, %254 : vector<8x32xi32>
    %256 = arith.select %255, %251, %228 : vector<8x32xi1>, vector<8x32xf32>
    %c0_26 = arith.constant 0 : index
    %c0_27 = arith.constant 0 : index
    %257 = vector.load %arg3[%c0_26, %c0_27] : memref<65x128xf32, #tpu.memory_space<vmem>>, vector<65x128xf32>
    %258 = vector.extract_strided_slice %257 {offsets = [0, 0], sizes = [32, 128], strides = [1, 1]} : vector<65x128xf32> to vector<32x128xf32>
    %259 = vector.extract_strided_slice %257 {offsets = [32, 0], sizes = [32, 128], strides = [1, 1]} : vector<65x128xf32> to vector<32x128xf32>
    %260 = vector.extract_strided_slice %257 {offsets = [64, 0], sizes = [1, 128], strides = [1, 1]} : vector<65x128xf32> to vector<1x128xf32>
    %261 = vector.extract_strided_slice %256 {offsets = [4, 0], sizes = [4, 32], strides = [1, 1]} : vector<8x32xf32> to vector<4x32xf32>
    %cst_28 = arith.constant dense<0.000000e+00> : vector<4x128xf32>
    %262 = tpu.matmul %261, %258, %cst_28 {dimension_numbers = #tpu.dot_dimension_numbers<[1], [0], [0], [1], [0, 0, 1, 1], [], []>} : vector<4x32xf32>, vector<32x128xf32>, vector<4x128xf32> -> vector<4x128xf32>
    %263 = vector.extract_strided_slice %256 {offsets = [0, 0], sizes = [4, 32], strides = [1, 1]} : vector<8x32xf32> to vector<4x32xf32>
    %cst_29 = arith.constant dense<0.000000e+00> : vector<4x128xf32>
    %264 = tpu.matmul %263, %259, %cst_29 {dimension_numbers = #tpu.dot_dimension_numbers<[1], [0], [0], [1], [0, 0, 1, 1], [], []>} : vector<4x32xf32>, vector<32x128xf32>, vector<4x128xf32> -> vector<4x128xf32>
    %265 = arith.addf %262, %264 : vector<4x128xf32>
    %266 = vector.broadcast %260 : vector<1x128xf32> to vector<4x128xf32>
    %267 = arith.addf %265, %266 : vector<4x128xf32>
    %c0_30 = arith.constant 0 : index
    %c0_31 = arith.constant 0 : index
    %268 = vector.load %arg4[%c0_30, %c0_31] : memref<4x128xf32, #tpu.memory_space<vmem>>, vector<4x128xf32>
    tpu.vector_store %arg4[%c0_30, %c0_31], %267 {strides = array<i32>} : memref<4x128xf32, #tpu.memory_space<vmem>>, vector<4x128xf32>,
    return
  }
}

</mosaic_0001>

<bundles_post_ra>
// kernel: forward.1
= control target key start
LH: loop header
LB: loop body
LE: loop exit
PB: predicated region body
PF: predicated region fallthrough
CT: control target
= control target key end

     0   :  { %v35_v3 = vlaneseq  ;;  %s1181_s0 = inlined_call_operand.vmem [shape: f32[64,128], index: 0, kind: input, shape index: {}]   ;;  %s1182_s1 = inlined_call_operand.vmem [shape: s32[8,1], index: 1, kind: input, shape index: {}]   ;;  %s1183_s2 = inlined_call_operand.vmem [shape: f32[64,128], index: 2, kind: input, shape index: {}]   ;;  %s1184_s3 = inlined_call_operand.vmem [shape: f32[65,128], index: 3, kind: input, shape index: {}]   ;;  %s1185_s4 = inlined_call_operand.hbm [shape: f32[4,128], index: 4, kind: output, shape index: {}]  }
   0x1   :  { %v892_v0 = vld [vmem:[%s1183_s2 + $0x18] sm:$0xff]  ;;  %v902_v2 = vld [vmem:[%s1183_s2 + $0x10] sm:$0xff]  ;;  %v914_v5 = vld [vmem:[%s1183_s2 + $0x8] sm:$0xff] }
   0x2   :  { %v897_v1 = vld [vmem:[%s1183_s2 + $0x38] sm:$0xff]  ;;  %62 = vmatpush.msra.mxu0 %v892_v0  ;;  %v909_v4 = vld [vmem:[%s1183_s2 + $0x30] sm:$0xff]  ;;  %v919_v6 = vld [vmem:[%s1183_s2 + $0x28] sm:$0xff]  ;;  %v36_v7 = vand.u32 127, %v35_v3  ;;  %v921_v8 = vshrl.u32 %v35_v3, 7  ;;  %145 = vmatpush.msra.mxu2 %v892_v0 }
   0x3   :  { %82 = vmatpush.msra.mxu1 %v897_v1  ;;  %165 = vmatpush.msra.mxu3 %v897_v1 }
   0x4   :  { %63 = vmatpush.msra.mxu0 %v902_v2 }
   0x5   :  { %83 = vmatpush.msra.mxu1 %v909_v4 }
   0x6   :  { %9 = vsyncpa [#allocation3], 0  ;;  %v930_v9 = vld [vmem:[%s1183_s2] sm:$0xff]  ;;  %vm43_vm0 = vcmp.lt.s32.totalorder %v36_v7, 16  ;;  %v44_v11 = vsub.s32 7, %v921_v8  ;;  %146 = vmatpush.msra.mxu2 %v902_v2  ;;  %166 = vmatpush.msra.mxu3 %v909_v4  ;;  %v857_v13 = vmov 0.0  }
   0x7   :  { %v935_v10 = vld [vmem:[%s1183_s2 + $0x20] sm:$0xff]  ;;  %64 = vmatpush.msra.mxu0 %v914_v5  ;;  %84 = vmatpush.msra.mxu1 %v919_v6  ;;  %vm37_vm1 = vcmp.lt.s32.totalorder %v36_v7, 96  ;;  %vm42_vm2 = vcmp.lt.s32.totalorder %v921_v8, 4  ;;  %v858_v17 = vmov 1.0   ;;  %s859_s6 = smov 32   ;;  %v860_v28 = vmov 0  }
   0x8   :  { %v943_v12 = vsel %vm43_vm0, %v921_v8, %v44_v11  ;;  %147 = vmatpush.msra.mxu2 %v914_v5  ;;  %167 = vmatpush.msra.mxu3 %v919_v6  ;;  %v27_v14 = vld [vmem:[%s1181_s0] sm:$0xff]  ;;  %v979_v18 = vsel %vm37_vm1, 0.5, %v858_v17  ;;  %v984_v23 = vsel %vm37_vm1, 0.5, %v857_v13  ;;  %s861_s9 = smov 64   ;;  %s862_s10 = smov 96   ;;  %vm46_vm4 = vcmask 261120  }
   0x9   :  { %65 = vmatpush.msra.mxu0 %v930_v9  ;;  %85 = vmatpush.msra.mxu1 %v935_v10  ;;  %v18_v33 = vld [vmem:[%s1182_s1] sm:$0xff]  ;;  %v115_v36 = vperm.slane %v943_v12, 0  ;;  %v28_v42 = vld [vmem:[%s1181_s0 + $0x8] sm:$0xff]  ;;  %v200_v60 = vperm.slane %v943_v12, 1  ;;  %v29_v7 = vld [vmem:[%s1181_s0 + $0x10] sm:$0xff]  ;;  %s863_s13 = smov [#allocation2]  }
   0xa   :  { %66 = vmatmul.f32.vlgmr.msra.gmra.mxu0 %v857_v13  ;;  %86 = vmatmul.f32.vlgmr.msra.gmra.mxu1 %v857_v13  ;;  %s762_s14 = sshll.u32 %s863_s13, 4  ;;  %s764_s17 = sshll.u32 %s1185_s4, 4  ;;  %s763_s14 = int_to_ptr.vmem [resolvable:$true] %s762_s14  ;;  %s765_s17 = int_to_ptr.hbm [resolvable:$true] %s764_s17 }
   0xb   :  { %148 = vmatpush.msra.mxu2 %v930_v9  ;;  %168 = vmatpush.msra.mxu3 %v935_v10 }
   0xc   :  { %227 = vmatpush.msrb.mxu0 %v892_v0  ;;  %247 = vmatpush.msrb.mxu1 %v897_v1 }
   0xd   :  { %309 = vmatpush.msrb.mxu2 %v892_v0  ;;  %329 = vmatpush.msrb.mxu3 %v897_v1 }
   0xe   :  { %228 = vmatpush.msrb.mxu0 %v902_v2  ;;  %248 = vmatpush.msrb.mxu1 %v909_v4 }
   0xf   :  { %310 = vmatpush.msrb.mxu2 %v902_v2  ;;  %330 = vmatpush.msrb.mxu3 %v909_v4 }
  0x10   :  { %229 = vmatpush.msrb.mxu0 %v914_v5  ;;  %249 = vmatpush.msrb.mxu1 %v919_v6 }
  0x11   :  { %311 = vmatpush.msrb.mxu2 %v914_v5  ;;  %331 = vmatpush.msrb.mxu3 %v919_v6 }
  0x12   :  { %230 = vmatpush.msrb.mxu0 %v930_v9  ;;  %250 = vmatpush.msrb.mxu1 %v935_v10 }
  0x13   :  { %312 = vmatpush.msrb.mxu2 %v930_v9  ;;  %332 = vmatpush.msrb.mxu3 %v935_v10 }
  0x14   :  { %391 = vmatpush.msra.mxu0 %v892_v0  ;;  %411 = vmatpush.msra.mxu1 %v897_v1 }
  0x15   :  { %796 = vset.pattern.permute.xlu1 %v860_v28  ;;  %797 = vset.pattern.permute.xlu0 %v860_v28 }
  0x16   :  { %392 = vmatpush.msra.mxu0 %v902_v2  ;;  %412 = vmatpush.msra.mxu1 %v909_v4 }
  0x18   :  { %393 = vmatpush.msra.mxu0 %v914_v5  ;;  %413 = vmatpush.msra.mxu1 %v919_v6 }
  0x1a   :  { %394 = vmatpush.msra.mxu0 %v930_v9  ;;  %414 = vmatpush.msra.mxu1 %v935_v10 }
  0x87   :  { %v67_v15 = vpop.f32.mrf.mxu0  ;;  %v87_v16 = vpop.f32.mrf.mxu1 }
  0x88   :  { %v92_v19 = vsel %vm42_vm2, %v67_v15, %v87_v16 }
  0x89   :  { %v93_v20 = vadd.f32 %v92_v19, %v27_v14 }
  0x8b   :  { %v94_v21 = vmul.f32 %v93_v20, %v979_v18 }
  0x8d   :  { %799 = vtanh.f32 %v94_v21 }
  0x93   :  { %v800_v22 = vpop.eup %799 }
  0x94   :  { %v96_v24 = vmul.f32 %v800_v22, %v979_v18 }
  0x96   :  { %v97_v25 = vadd.f32 %v96_v24, %v984_v23 }
  0x98   :  { %100 = vrot.lane.b32.xlu0 %v97_v25, %s859_s6  ;;  %v98_v29 = vmul.f32 0.0, %v97_v25 }
 0x10a   :  { %v101_v26 = vpop.permute.xlu0 %100 }
 0x10b   :  { %v103_v27 = vmul.f32 %v101_v26, %v97_v25 }
 0x10d   :  { %105 = vrot.lane.b32.xlu0 %v103_v27, %s859_s6 }
 0x17f   :  { %v106_v30 = vpop.permute.xlu0 %105 }
 0x180   :  { %v108_v31 = vadd.f32 %v106_v30, %v98_v29 }
 0x182   :  { %801 = vtanh.f32 %v108_v31 }
 0x188   :  { %v802_v32 = vpop.eup %801 }
 0x189   :  { %111 = vrot.lane.b32.xlu1 %v802_v32, %s859_s6 }
 0x191   :  { %117 = vperm.xlu1 %796, %v18_v33  }
 0x1fb   :  { %v112_v34 = vpop.permute.xlu1 %111 }
 0x1fc   :  { %v114_v35 = vmul.f32 %v112_v34, %v97_v25 }
 0x1fe   :  { %126 = vrot.lane.b32.xlu2 %v114_v35, %s861_s9 }
 0x203   :  { %v997_v37 = vpop.permute.xlu1 %117 }
 0x204   :  { %vm119_vm3 = vcmp.lt.s32.totalorder %v115_v36, %v997_v37  ;;  %vm201_vm5 = vcmp.lt.s32.totalorder %v200_v60, %v997_v37  ;;  %v30_v36 = vld [vmem:[%s1181_s0 + $0x18] sm:$0xff] }
 0x206   :  { %121 = vrot.lane.b32.xlu2 %v108_v31, %s862_s10  ;;  %v282_v31 = vperm.slane %v943_v12, 2 }
 0x208   :  { %vm283_vm6 = vcmp.lt.s32.totalorder %v282_v31, %v997_v37 }
 0x258   :  { %v127_v38 = vpop.permute.xlu2 %126 }
 0x259   :  { %v129_v39 = vsel %vm119_vm3, %v127_v38, 0.0 }
 0x25a   :  { %773 = vmatmul.msk.f32.vlgmr.msra.gmra.mxu2 %vm46_vm4, %v129_v39  ;;  %774 = vmatmul.msk.f32.vlgmr.msra.gmra.mxu3 %vm46_vm4, %v129_v39 }
 0x25b   :  { %473 = vmatpush.msra.mxu2 %v892_v0  ;;  %493 = vmatpush.msra.mxu3 %v897_v1 }
 0x25d   :  { %474 = vmatpush.msra.mxu2 %v902_v2  ;;  %494 = vmatpush.msra.mxu3 %v909_v4 }
 0x25f   :  { %475 = vmatpush.msra.mxu2 %v914_v5  ;;  %495 = vmatpush.msra.mxu3 %v919_v6 }
 0x260   :  { %v122_v40 = vpop.permute.xlu2 %121 }
 0x261   :  { %v124_v41 = vsel %vm119_vm3, %v122_v40, 0.0  ;;  %476 = vmatpush.msra.mxu2 %v930_v9  ;;  %496 = vmatpush.msra.mxu3 %v935_v10 }
 0x262   :  { %180 = vrot.lane.b32.xlu1 %v124_v41, %s859_s6 }
 0x2d4   :  { %v181_v53 = vpop.permute.xlu1 %180 }
 0x2dd   :  { %v150_v43 = vpop.f32.mrf.mxu2  ;;  %v170_v44 = vpop.f32.mrf.mxu3 }
 0x2de   :  { %v173_v45 = vsel %vm42_vm2, %v150_v43, %v170_v44 }
 0x2df   :  { %v174_v46 = vadd.f32 %v173_v45, %v28_v42 }
 0x2e1   :  { %v175_v47 = vmul.f32 %v174_v46, %v979_v18 }
 0x2e3   :  { %803 = vtanh.f32 %v175_v47  ;;  %v364_v47 = vperm.slane %v943_v12, 3 }
 0x2e5   :  { %vm365_vm7 = vcmp.lt.s32.totalorder %v364_v47, %v997_v37 }
 0x2e9   :  { %v804_v48 = vpop.eup %803 }
 0x2ea   :  { %v177_v49 = vmul.f32 %v804_v48, %v979_v18 }
 0x2ec   :  { %v178_v50 = vadd.f32 %v177_v49, %v984_v23 }
 0x2ee   :  { %185 = vrot.lane.b32.xlu0 %v178_v50, %s859_s6  ;;  %v183_v54 = vmul.f32 %v181_v53, %v178_v50 }
 0x360   :  { %v186_v51 = vpop.permute.xlu0 %185 }
 0x361   :  { %v188_v52 = vmul.f32 %v186_v51, %v178_v50 }
 0x363   :  { %190 = vrot.lane.b32.xlu2 %v188_v52, %s859_s6  ;;  %v31_v52 = vld [vmem:[%s1181_s0 + $0x20] sm:$0xff] }
 0x3bd   :  { %v191_v55 = vpop.permute.xlu2 %190 }
 0x3be   :  { %v193_v56 = vadd.f32 %v191_v55, %v183_v54 }
 0x3c0   :  { %805 = vtanh.f32 %v193_v56  ;;  %203 = vrot.lane.b32.xlu2 %v193_v56, %s862_s10 }
 0x3c6   :  { %v806_v57 = vpop.eup %805 }
 0x3c7   :  { %196 = vrot.lane.b32.xlu0 %v806_v57, %s859_s6 }
 0x41a   :  { %v204_v61 = vpop.permute.xlu2 %203 }
 0x41b   :  { %v206_v62 = vsel %vm201_vm5, %v204_v61, %v124_v41 }
 0x439   :  { %v197_v58 = vpop.permute.xlu0 %196 }
 0x43a   :  { %v199_v59 = vmul.f32 %v197_v58, %v178_v50 }
 0x43c   :  { %208 = vrot.lane.b32.xlu1 %v199_v59, %s861_s9 }
 0x444   :  { %262 = vrot.lane.b32.xlu1 %v206_v62, %s859_s6 }
 0x4ae   :  { %v209_v63 = vpop.permute.xlu1 %208 }
 0x4af   :  { %v211_v3 = vsel %vm201_vm5, %v209_v63, %v129_v39 }
 0x4b0   :  { %775 = vmatmul.msk.f32.vlgmr.msrb.gmra.mxu0 %vm46_vm4, %v211_v3  ;;  %776 = vmatmul.msk.f32.vlgmr.msrb.gmra.mxu1 %vm46_vm4, %v211_v3 }
 0x4b1   :  { %555 = vmatpush.msrb.mxu0 %v892_v0  ;;  %575 = vmatpush.msrb.mxu1 %v897_v1 }
 0x4b3   :  { %556 = vmatpush.msrb.mxu0 %v902_v2  ;;  %576 = vmatpush.msrb.mxu1 %v909_v4 }
 0x4b5   :  { %557 = vmatpush.msrb.mxu0 %v914_v5  ;;  %577 = vmatpush.msrb.mxu1 %v919_v6 }
 0x4b6   :  { %v263_v24 = vpop.permute.xlu1 %262 }
 0x4b7   :  { %558 = vmatpush.msrb.mxu0 %v930_v9  ;;  %578 = vmatpush.msrb.mxu1 %v935_v10 }
 0x52d   :  { %v232_v11 = vpop.f32.mrf.mxu0  ;;  %v252_v13 = vpop.f32.mrf.mxu1 }
 0x52e   :  { %v255_v14 = vsel %vm42_vm2, %v232_v11, %v252_v13 }
 0x52f   :  { %v256_v15 = vadd.f32 %v255_v14, %v29_v7 }
 0x531   :  { %v257_v16 = vmul.f32 %v256_v15, %v979_v18 }
 0x533   :  { %807 = vtanh.f32 %v257_v16  ;;  %v446_v16 = vperm.slane %v943_v12, 4 }
 0x535   :  { %vm447_vm8 = vcmp.lt.s32.totalorder %v446_v16, %v997_v37 }
 0x539   :  { %v808_v17 = vpop.eup %807 }
 0x53a   :  { %v259_v19 = vmul.f32 %v808_v17, %v979_v18 }
 0x53c   :  { %v260_v20 = vadd.f32 %v259_v19, %v984_v23 }
 0x53e   :  { %267 = vrot.lane.b32.xlu0 %v260_v20, %s859_s6  ;;  %v265_v25 = vmul.f32 %v263_v24, %v260_v20 }
 0x5b0   :  { %v268_v21 = vpop.permute.xlu0 %267 }
 0x5b1   :  { %v270_v22 = vmul.f32 %v268_v21, %v260_v20 }
 0x5b3   :  { %272 = vrot.lane.b32.xlu2 %v270_v22, %s859_s6  ;;  %v32_v22 = vld [vmem:[%s1181_s0 + $0x28] sm:$0xff] }
 0x60d   :  { %v273_v26 = vpop.permute.xlu2 %272 }
 0x60e   :  { %v275_v27 = vadd.f32 %v273_v26, %v265_v25 }
 0x610   :  { %809 = vtanh.f32 %v275_v27  ;;  %285 = vrot.lane.b32.xlu2 %v275_v27, %s862_s10 }
 0x616   :  { %v810_v28 = vpop.eup %809 }
 0x617   :  { %278 = vrot.lane.b32.xlu0 %v810_v28, %s859_s6 }
 0x66a   :  { %v286_v32 = vpop.permute.xlu2 %285 }
 0x66b   :  { %v288_v33 = vsel %vm283_vm6, %v286_v32, %v206_v62 }
 0x689   :  { %v279_v29 = vpop.permute.xlu0 %278 }
 0x68a   :  { %v281_v30 = vmul.f32 %v279_v29, %v260_v20 }
 0x68c   :  { %290 = vrot.lane.b32.xlu1 %v281_v30, %s861_s9 }
 0x694   :  { %344 = vrot.lane.b32.xlu1 %v288_v33, %s859_s6 }
 0x6fe   :  { %v291_v34 = vpop.permute.xlu1 %290 }
 0x6ff   :  { %v293_v35 = vsel %vm283_vm6, %v291_v34, %v211_v3 }
 0x700   :  { %777 = vmatmul.msk.f32.vlgmr.msrb.gmra.mxu2 %vm46_vm4, %v293_v35  ;;  %778 = vmatmul.msk.f32.vlgmr.msrb.gmra.mxu3 %vm46_vm4, %v293_v35 }
 0x701   :  { %637 = vmatpush.msrb.mxu2 %v892_v0  ;;  %657 = vmatpush.msrb.mxu3 %v897_v1 }
 0x703   :  { %638 = vmatpush.msrb.mxu2 %v902_v2  ;;  %658 = vmatpush.msrb.mxu3 %v909_v4 }
 0x705   :  { %639 = vmatpush.msrb.mxu2 %v914_v5  ;;  %659 = vmatpush.msrb.mxu3 %v919_v6 }
 0x706   :  { %v345_v40 = vpop.permute.xlu1 %344 }
 0x707   :  { %640 = vmatpush.msrb.mxu2 %v930_v9  ;;  %660 = vmatpush.msrb.mxu3 %v935_v10 }
 0x783   :  { %v314_v38 = vpop.f32.mrf.mxu2  ;;  %v334_v0 = vpop.f32.mrf.mxu3 }
 0x784   :  { %v337_v1 = vsel %vm42_vm2, %v314_v38, %v334_v0 }
 0x785   :  { %v338_v2 = vadd.f32 %v337_v1, %v30_v36 }
 0x787   :  { %v339_v4 = vmul.f32 %v338_v2, %v979_v18 }
 0x789   :  { %811 = vtanh.f32 %v339_v4  ;;  %v528_v4 = vperm.slane %v943_v12, 5 }
 0x78b   :  { %vm529_vm9 = vcmp.lt.s32.totalorder %v528_v4, %v997_v37 }
 0x78f   :  { %v812_v5 = vpop.eup %811 }
 0x790   :  { %v341_v6 = vmul.f32 %v812_v5, %v979_v18 }
 0x792   :  { %v342_v9 = vadd.f32 %v341_v6, %v984_v23 }
 0x794   :  { %349 = vrot.lane.b32.xlu0 %v342_v9, %s859_s6  ;;  %v347_v41 = vmul.f32 %v345_v40, %v342_v9 }
 0x806   :  { %v350_v10 = vpop.permute.xlu0 %349 }
 0x807   :  { %v352_v39 = vmul.f32 %v350_v10, %v342_v9 }
 0x809   :  { %354 = vrot.lane.b32.xlu2 %v352_v39, %s859_s6  ;;  %v33_v39 = vld [vmem:[%s1181_s0 + $0x30] sm:$0xff] }
 0x863   :  { %v355_v42 = vpop.permute.xlu2 %354 }
 0x864   :  { %v357_v43 = vadd.f32 %v355_v42, %v347_v41 }
 0x866   :  { %813 = vtanh.f32 %v357_v43  ;;  %367 = vrot.lane.b32.xlu2 %v357_v43, %s862_s10 }
 0x86c   :  { %v814_v44 = vpop.eup %813 }
 0x86d   :  { %360 = vrot.lane.b32.xlu0 %v814_v44, %s859_s6 }
 0x8c0   :  { %v368_v48 = vpop.permute.xlu2 %367 }
 0x8c1   :  { %v370_v49 = vsel %vm365_vm7, %v368_v48, %v288_v33 }
 0x8df   :  { %v361_v45 = vpop.permute.xlu0 %360 }
 0x8e0   :  { %v363_v46 = vmul.f32 %v361_v45, %v342_v9 }
 0x8e2   :  { %372 = vrot.lane.b32.xlu1 %v363_v46, %s861_s9 }
 0x8ea   :  { %426 = vrot.lane.b32.xlu1 %v370_v49, %s859_s6 }
 0x954   :  { %v373_v50 = vpop.permute.xlu1 %372 }
 0x955   :  { %v375_v51 = vsel %vm365_vm7, %v373_v50, %v293_v35 }
 0x956   :  { %779 = vmatmul.msk.f32.vlgmr.msra.gmra.mxu0 %vm46_vm4, %v375_v51  ;;  %780 = vmatmul.msk.f32.vlgmr.msra.gmra.mxu1 %vm46_vm4, %v375_v51 }
 0x95c   :  { %v427_v63 = vpop.permute.xlu1 %426 }
 0x9d3   :  { %v396_v53 = vpop.f32.mrf.mxu0  ;;  %v416_v54 = vpop.f32.mrf.mxu1 }
 0x9d4   :  { %v419_v55 = vsel %vm42_vm2, %v396_v53, %v416_v54 }
 0x9d5   :  { %v420_v56 = vadd.f32 %v419_v55, %v31_v52 }
 0x9d7   :  { %v421_v57 = vmul.f32 %v420_v56, %v979_v18 }
 0x9d9   :  { %815 = vtanh.f32 %v421_v57  ;;  %v610_v57 = vperm.slane %v943_v12, 6 }
 0x9db   :  { %vm611_vm10 = vcmp.lt.s32.totalorder %v610_v57, %v997_v37 }
 0x9df   :  { %v816_v58 = vpop.eup %815 }
 0x9e0   :  { %v423_v59 = vmul.f32 %v816_v58, %v979_v18 }
 0x9e2   :  { %v424_v60 = vadd.f32 %v423_v59, %v984_v23 }
 0x9e4   :  { %431 = vrot.lane.b32.xlu0 %v424_v60, %s859_s6  ;;  %v429_v3 = vmul.f32 %v427_v63, %v424_v60 }
 0xa56   :  { %v432_v61 = vpop.permute.xlu0 %431 }
 0xa57   :  { %v434_v62 = vmul.f32 %v432_v61, %v424_v60 }
 0xa59   :  { %436 = vrot.lane.b32.xlu2 %v434_v62, %s859_s6  ;;  %v34_v62 = vld [vmem:[%s1181_s0 + $0x38] sm:$0xff] }
 0xab3   :  { %v437_v7 = vpop.permute.xlu2 %436 }
 0xab4   :  { %v439_v11 = vadd.f32 %v437_v7, %v429_v3 }
 0xab6   :  { %817 = vtanh.f32 %v439_v11  ;;  %449 = vrot.lane.b32.xlu2 %v439_v11, %s862_s10 }
 0xabc   :  { %v818_v13 = vpop.eup %817 }
 0xabd   :  { %442 = vrot.lane.b32.xlu0 %v818_v13, %s859_s6 }
 0xb10   :  { %v450_v17 = vpop.permute.xlu2 %449 }
 0xb11   :  { %v452_v19 = vsel %vm447_vm8, %v450_v17, %v370_v49 }
 0xb2f   :  { %v443_v14 = vpop.permute.xlu0 %442 }
 0xb30   :  { %v445_v15 = vmul.f32 %v443_v14, %v424_v60 }
 0xb32   :  { %454 = vrot.lane.b32.xlu1 %v445_v15, %s861_s9 }
 0xb3a   :  { %508 = vrot.lane.b32.xlu1 %v452_v19, %s859_s6 }
 0xba4   :  { %v455_v20 = vpop.permute.xlu1 %454 }
 0xba5   :  { %v457_v21 = vsel %vm447_vm8, %v455_v20, %v375_v51 }
 0xba6   :  { %781 = vmatmul.msk.f32.vlgmr.msra.gmra.mxu2 %vm46_vm4, %v457_v21  ;;  %782 = vmatmul.msk.f32.vlgmr.msra.gmra.mxu3 %vm46_vm4, %v457_v21 }
 0xbac   :  { %v509_v34 = vpop.permute.xlu1 %508 }
 0xc29   :  { %v478_v24 = vpop.f32.mrf.mxu2  ;;  %v498_v25 = vpop.f32.mrf.mxu3 }
 0xc2a   :  { %v501_v26 = vsel %vm42_vm2, %v478_v24, %v498_v25  ;;  %v705_v25 = vld [vmem:[%s1184_s3 + $0x30] sm:$0xff] }
 0xc2b   :  { %v502_v27 = vadd.f32 %v501_v26, %v32_v22  ;;  %v701_v26 = vld [vmem:[%s1184_s3 + $0x10] sm:$0xff] }
 0xc2d   :  { %v503_v28 = vmul.f32 %v502_v27, %v979_v18  ;;  %v704_v27 = vld [vmem:[%s1184_s3 + $0x28] sm:$0xff] }
 0xc2f   :  { %819 = vtanh.f32 %v503_v28  ;;  %v700_v28 = vld [vmem:[%s1184_s3 + $0x8] sm:$0xff] }
 0xc35   :  { %v820_v29 = vpop.eup %819 }
 0xc36   :  { %v505_v30 = vmul.f32 %v820_v29, %v979_v18 }
 0xc38   :  { %v506_v31 = vadd.f32 %v505_v30, %v984_v23 }
 0xc3a   :  { %513 = vrot.lane.b32.xlu0 %v506_v31, %s859_s6  ;;  %v511_v35 = vmul.f32 %v509_v34, %v506_v31 }
 0xcac   :  { %v514_v32 = vpop.permute.xlu0 %513 }
 0xcad   :  { %v516_v33 = vmul.f32 %v514_v32, %v506_v31  ;;  %v699_v32 = vld [vmem:[%s1184_s3] sm:$0xff] }
 0xcaf   :  { %518 = vrot.lane.b32.xlu2 %v516_v33, %s859_s6  ;;  %v692_v33 = vperm.slane %v943_v12, 7 }
 0xcb1   :  { %vm693_vm11 = vcmp.lt.s32.totalorder %v692_v33, %v997_v37 }
 0xd09   :  { %v519_v36 = vpop.permute.xlu2 %518 }
 0xd0a   :  { %v521_v38 = vadd.f32 %v519_v36, %v511_v35 }
 0xd0c   :  { %821 = vtanh.f32 %v521_v38  ;;  %531 = vrot.lane.b32.xlu2 %v521_v38, %s862_s10  ;;  %v798_v38 = vld [vmem:[%s1184_s3 + $0x40] ss:$0 sm:$0xff] }
 0xd12   :  { %v822_v0 = vpop.eup %821 }
 0xd13   :  { %524 = vrot.lane.b32.xlu0 %v822_v0, %s859_s6 }
 0xd66   :  { %v532_v5 = vpop.permute.xlu2 %531 }
 0xd67   :  { %v534_v6 = vsel %vm529_vm9, %v532_v5, %v452_v19 }
 0xd85   :  { %v525_v1 = vpop.permute.xlu0 %524 }
 0xd86   :  { %v527_v2 = vmul.f32 %v525_v1, %v506_v31  ;;  %v703_v31 = vld [vmem:[%s1184_s3 + $0x20] sm:$0xff] }
 0xd88   :  { %536 = vrot.lane.b32.xlu1 %v527_v2, %s861_s9 }
 0xd90   :  { %590 = vrot.lane.b32.xlu1 %v534_v6, %s859_s6 }
 0xdfa   :  { %v537_v9 = vpop.permute.xlu1 %536 }
 0xdfb   :  { %v539_v10 = vsel %vm529_vm9, %v537_v9, %v457_v21 }
 0xdfc   :  { %783 = vmatmul.msk.f32.vlgmr.msrb.gmra.mxu0 %vm46_vm4, %v539_v10  ;;  %784 = vmatmul.msk.f32.vlgmr.msrb.gmra.mxu1 %vm46_vm4, %v539_v10 }
 0xe02   :  { %v591_v50 = vpop.permute.xlu1 %590 }
 0xe79   :  { %v560_v40 = vpop.f32.mrf.mxu0  ;;  %v580_v41 = vpop.f32.mrf.mxu1 }
 0xe7a   :  { %v583_v42 = vsel %vm42_vm2, %v560_v40, %v580_v41 }
 0xe7b   :  { %v584_v43 = vadd.f32 %v583_v42, %v33_v39 }
 0xe7d   :  { %v585_v44 = vmul.f32 %v584_v43, %v979_v18 }
 0xe7f   :  { %823 = vtanh.f32 %v585_v44 }
 0xe85   :  { %v824_v45 = vpop.eup %823 }
 0xe86   :  { %v587_v46 = vmul.f32 %v824_v45, %v979_v18 }
 0xe88   :  { %v588_v47 = vadd.f32 %v587_v46, %v984_v23 }
 0xe8a   :  { %595 = vrot.lane.b32.xlu0 %v588_v47, %s859_s6  ;;  %v593_v51 = vmul.f32 %v591_v50, %v588_v47 }
 0xefc   :  { %v596_v48 = vpop.permute.xlu0 %595 }
 0xefd   :  { %v598_v49 = vmul.f32 %v596_v48, %v588_v47 }
 0xeff   :  { %600 = vrot.lane.b32.xlu2 %v598_v49, %s859_s6 }
 0xf59   :  { %v601_v52 = vpop.permute.xlu2 %600 }
 0xf5a   :  { %v603_v53 = vadd.f32 %v601_v52, %v593_v51 }
 0xf5c   :  { %825 = vtanh.f32 %v603_v53  ;;  %613 = vrot.lane.b32.xlu2 %v603_v53, %s862_s10 }
 0xf62   :  { %v826_v54 = vpop.eup %825 }
 0xf63   :  { %606 = vrot.lane.b32.xlu0 %v826_v54, %s859_s6 }
 0xfb6   :  { %v614_v58 = vpop.permute.xlu2 %613 }
 0xfb7   :  { %v616_v59 = vsel %vm611_vm10, %v614_v58, %v534_v6 }
 0xfd5   :  { %v607_v55 = vpop.permute.xlu0 %606 }
 0xfd6   :  { %v609_v56 = vmul.f32 %v607_v55, %v588_v47 }
 0xfd8   :  { %618 = vrot.lane.b32.xlu1 %v609_v56, %s861_s9 }
 0xfe0   :  { %672 = vrot.lane.b32.xlu1 %v616_v59, %s859_s6 }
0x104a   :  { %v619_v60 = vpop.permute.xlu1 %618 }
0x104b   :  { %v621_v61 = vsel %vm611_vm10, %v619_v60, %v539_v10 }
0x104c   :  { %785 = vmatmul.msk.f32.vlgmr.msrb.gmra.mxu2 %vm46_vm4, %v621_v61  ;;  %786 = vmatmul.msk.f32.vlgmr.msrb.gmra.mxu3 %vm46_vm4, %v621_v61 }
0x1052   :  { %v673_v20 = vpop.permute.xlu1 %672 }
0x10cf   :  { %v642_v63 = vpop.f32.mrf.mxu2  ;;  %v662_v3 = vpop.f32.mrf.mxu3 }
0x10d0   :  { %v665_v7 = vsel %vm42_vm2, %v642_v63, %v662_v3 }
0x10d1   :  { %v666_v11 = vadd.f32 %v665_v7, %v34_v62 }
0x10d3   :  { %v667_v13 = vmul.f32 %v666_v11, %v979_v18 }
0x10d5   :  { %827 = vtanh.f32 %v667_v13 }
0x10db   :  { %v828_v14 = vpop.eup %827 }
0x10dc   :  { %v669_v15 = vmul.f32 %v828_v14, %v979_v18  ;;  %v706_v18 = vld [vmem:[%s1184_s3 + $0x38] sm:$0xff] }
0x10dd   :  { %723 = vmatpush.msra.mxu0 %v706_v18 }
0x10de   :  { %v670_v16 = vadd.f32 %v669_v15, %v984_v23  ;;  %v702_v23 = vld [vmem:[%s1184_s3 + $0x18] sm:$0xff] }
0x10df   :  { %746 = vmatpush.msra.mxu1 %v702_v23  ;;  %724 = vmatpush.msra.mxu0 %v705_v25 }
0x10e0   :  { %677 = vrot.lane.b32.xlu0 %v670_v16, %s859_s6  ;;  %v675_v21 = vmul.f32 %v673_v20, %v670_v16 }
0x10e1   :  { %747 = vmatpush.msra.mxu1 %v701_v26  ;;  %725 = vmatpush.msra.mxu0 %v704_v27 }
0x10e3   :  { %748 = vmatpush.msra.mxu1 %v700_v28  ;;  %726 = vmatpush.msra.mxu0 %v703_v31 }
0x10e5   :  { %749 = vmatpush.msra.mxu1 %v699_v32 }
0x1152   :  { %v678_v17 = vpop.permute.xlu0 %677 }
0x1153   :  { %v680_v19 = vmul.f32 %v678_v17, %v670_v16 }
0x1155   :  { %682 = vrot.lane.b32.xlu2 %v680_v19, %s859_s6 }
0x11af   :  { %v683_v22 = vpop.permute.xlu2 %682 }
0x11b0   :  { %v685_v8 = vadd.f32 %v683_v22, %v675_v21 }
0x11b2   :  { %829 = vtanh.f32 %v685_v8 }
0x11b8   :  { %v830_v24 = vpop.eup %829 }
0x11b9   :  { %688 = vrot.lane.b32.xlu0 %v830_v24, %s859_s6 }
0x122b   :  { %v689_v29 = vpop.permute.xlu0 %688 }
0x122c   :  { %v691_v30 = vmul.f32 %v689_v29, %v670_v16 }
0x122e   :  { %695 = vrot.lane.b32.xlu1 %v691_v30, %s861_s9 }
0x12a0   :  { %v696_v34 = vpop.permute.xlu1 %695 }
0x12a1   :  { %v698_v35 = vsel %vm693_vm11, %v696_v34, %v621_v61 }
0x12a2   :  { %v731_v36 = vrot.slane %v698_v35, 4  ;;  %787 = vmatmul.msk.f32.vlgmr.msra.gmra.mxu0 %vm46_vm4, %v698_v35 }
0x12a4   :  { %788 = vmatmul.msk.f32.vlgmr.msra.gmra.mxu1 %vm46_vm4, %v731_v36 }
0x131f   :  { %v728_v0 = vpop.f32.mrf.mxu0 }
0x1321   :  { %v751_v1 = vpop.f32.mrf.mxu1 }
0x1322   :  { %v752_v12 = vadd.f32 %v751_v1, %v728_v0 }
0x1324   :  { %v755_v37 = vadd.f32 %v798_v38, %v752_v12 }
0x1326   :  { %756 = vst [vmem:[#allocation2] sm:$0xf] %v755_v37 }
0x1327   :  { %767 = dma.vmem_to_hbm [thread:$0]  %s763_s14, 64, %s765_s17, [#allocation3]  }
0x1328   :  { %855 = dma.done.wait [#allocation3], 64  }
0x1329   :  { %856 = vsyncadd [#allocation3], 4294967232 }
0x132a   :  { %772 = vsyncpa [#allocation3], 1 }

</bundles_post_ra>
